<compile_context>
chip_gen: v5e
topology: v5e:2x2
jax: 0.10.0
libtpu: 0.0.40
codegen_flags: <defaults>
</compile_context>

<pallas_src>
import functools

import jax
import jax.numpy as jnp
from jax import lax
from jax.experimental import pallas as pl
from jax.experimental.pallas import tpu as pltpu


def _fold_rows(v, acc_rows):
    """Sum an (r, 128) f32 tile into (acc_rows, 128) with sublane-dense VPU adds.

    By construction r == acc_rows or (acc_rows == 8 and r % 8 == 0), so the
    reshape only splits the sublane axis at tile granularity (no relayout).
    """
    r = v.shape[0]
    if r == acc_rows:
        return v
    return jnp.sum(v.reshape(r // acc_rows, acc_rows, 128), axis=0)


def _focal_ce_kernel(x_ref, t_ref, o_ref, *, hw, r_blk, acc_rows, p_total,
                     p_per, needs_mask):
    """Accumulate -log_softmax(logits)[class=target] over a (r_blk, 128) pixel tile."""
    s = pl.program_id(1)          # pixel split (parallel, v7x second core)
    p = pl.program_id(2)          # pixel chunk (arbitrary / reduction)

    @pl.when(p == 0)
    def _init():
        o_ref[...] = jnp.zeros_like(o_ref)

    x = x_ref[0].astype(jnp.float32)      # (C, r_blk, 128) logits
    t = t_ref[0, 0].astype(jnp.int32)     # (r_blk, 128) target class ids

    # Numerically stable log-softmax over the class (leading slab) axis: the
    # reductions are C-1 elementwise vreg max/add ops on the VPU.
    m = jnp.max(x, axis=0)                                 # (r_blk, 128)
    z = x - m[None]
    lse = jnp.log(jnp.sum(jnp.exp(z), axis=0))             # (r_blk, 128)

    # Gather the target-class logit with a select (no one-hot astype+multiply).
    cls = lax.broadcasted_iota(jnp.int32, x.shape, 0)
    z_t = jnp.sum(jnp.where(cls == t[None], z, 0.0), axis=0)
    contrib = lse - z_t                                    # -log p_target

    def _accumulate(v):
        o_ref[...] += _fold_rows(v, acc_rows)[None, None]

    if needs_mask:
        # Only the trailing chunk(s) can contain padded / out-of-range pixels;
        # keep iota + compare + select off the steady-state path.
        g = s * p_per + p                  # global chunk id (may be >= p_total)
        is_edge = g >= p_total - 1

        @pl.when(is_edge)
        def _masked():
            row = lax.broadcasted_iota(jnp.int32, (r_blk, 128), 0)
            lane = lax.broadcasted_iota(jnp.int32, (r_blk, 128), 1)
            pix = (g * r_blk + row) * 128 + lane           # linear pixel index
            # Select (not multiply): garbage lanes cannot inject NaN/Inf.
            _accumulate(jnp.where(pix < hw, contrib, 0.0))

        @pl.when(jnp.logical_not(is_edge))
        def _interior():
            _accumulate(contrib)
    else:
        _accumulate(contrib)


def _vmem_budget():
    """Return (vmem_limit_bytes or None, working budget for tile sizing)."""
    try:
        cap = int(pltpu.get_tpu_info().vmem_capacity_bytes)
    except Exception:
        cap = 0
    if cap <= 0:
        # Unknown chip: stay inside every generation's default scoped VMEM.
        return None, 12 * 2**20
    limit = min((cap * 3) // 4, 96 * 2**20)    # 96 MiB on v5e/v6e, 48 MiB on v7x
    return limit, max(8 * 2**20, limit - 4 * 2**20)


def focal_loss_2d(logits_nchw, target_nhw, *, gamma=0.0, weight=None,
                  size_average=True):
    """Focal loss over (N, C, H, W) logits and (N, H, W) integer targets."""
    del weight        # built by the reference forward but never passed to CE
    del size_average  # mean()/sum() of a scalar is the scalar itself
    n, c, h, w = logits_nchw.shape
    hw = h * w
    r_total = pl.cdiv(hw, 128)             # number of 128-lane pixel rows

    # NCHW is read directly; reshapes of contiguous arrays are free metadata ops.
    x = logits_nchw.reshape(n, c, hw)
    # Targets keep their original integer dtype (uint8/int16/int32 all work);
    # no wrapper-side astype -> no extra HBM pass over the target array.
    t = target_nhw.reshape(n, 1, hw)
    if hw != r_total * 128:
        # Rare ragged case (H*W not a multiple of 128): one pad pass so the
        # pixel axis factors into (rows, 128 lanes); padded pixels are masked
        # out inside the kernel's edge chunk.
        pad = r_total * 128 - hw
        x = jnp.pad(x, ((0, 0), (0, 0), (0, pad)))
        t = jnp.pad(t, ((0, 0), (0, 0), (0, pad)))
    x = x.reshape(n, c, r_total, 128)
    t = t.reshape(n, 1, r_total, 128)

    x_b = jnp.dtype(x.dtype).itemsize
    t_b = jnp.dtype(t.dtype).itemsize
    # Sublane multiple of the packed dtypes (f32/i32: 8, bf16/i16: 16, i8: 32).
    row_mult = max(32 // x_b, 32 // t_b)

    vmem_limit, budget = _vmem_budget()
    # Real per-row VMEM footprint: double-buffered logits + target tiles plus
    # ~3 f32 elementwise intermediates the size of the logits tile.
    per_row = 128 * (2 * c * x_b + 2 * t_b + 3 * c * 4)
    budget_rows = max(row_mult, budget // per_row)
    # Diminishing returns past a few-MiB logits tile; keep the double-buffered
    # total comfortable on v7x's 64 MiB per-core VMEM.
    cap_rows = max(row_mult, (12 * 2**20) // (c * 128 * x_b))
    max_rows = max(row_mult, (min(budget_rows, cap_rows) // row_mult) * row_mult)

    if r_total <= 8 or (r_total <= max_rows and r_total % 8 == 0):
        r_blk = r_total                    # one chunk: block == full pixel extent
    else:
        r_blk = max(row_mult, (min(max_rows, r_total) // row_mult) * row_mult)
    acc_rows = min(8, r_blk)               # dense accumulator rows

    p_total = pl.cdiv(r_total, r_blk)      # pixel chunks per batch row
    # Give v7x's second TensorCore work when the batch axis alone cannot
    # (N == 1 or odd); harmless on single-core v5e/v6e.
    split = 2 if (n % 2 == 1 and p_total >= 2) else 1
    p_per = pl.cdiv(p_total, split)

    needs_mask = (hw != r_total * 128 or r_total % r_blk != 0
                  or p_total % split != 0)

    def _in_map(b, s, p):
        # Clamp so a fully out-of-range chunk (uneven split) still DMAs valid
        # data; its contribution is masked to zero inside the kernel.
        return (b, 0, jnp.minimum(s * p_per + p, p_total - 1), 0)

    kernel = functools.partial(
        _focal_ce_kernel, hw=hw, r_blk=r_blk, acc_rows=acc_rows,
        p_total=p_total, p_per=p_per, needs_mask=needs_mask)

    cost = pl.CostEstimate(
        flops=7 * n * hw * c,
        transcendentals=n * hw * (c + 1),
        bytes_accessed=(x.size * x_b + t.size * t_b
                        + n * split * acc_rows * 128 * 4),
    )

    partials = pl.pallas_call(
        kernel,
        out_shape=jax.ShapeDtypeStruct((n, split, acc_rows, 128), jnp.float32),
        grid=(n, split, p_per),
        in_specs=[
            pl.BlockSpec((1, c, r_blk, 128), _in_map),    # logits tile
            pl.BlockSpec((1, 1, r_blk, 128), _in_map),    # target tile
        ],
        out_specs=pl.BlockSpec((1, 1, acc_rows, 128),
                               lambda b, s, p: (b, s, 0, 0)),
        compiler_params=pltpu.CompilerParams(
            dimension_semantics=("parallel", "parallel", "arbitrary"),
            vmem_limit_bytes=vmem_limit),
        cost_estimate=cost,
    )(x, t)

    # F.cross_entropy(reduction='mean') over all N*H*W pixels (no class weight).
    ce_sum = jnp.sum(partials)
    logpt = -(ce_sum / jnp.float32(n * hw))
    pt = jnp.exp(logpt)
    loss = -(1.0 - pt) ** jnp.float32(gamma) * logpt
    # loss is a scalar; .mean() / .sum() of a scalar are the scalar itself.
    return loss


def _reference_focal_loss(logits_nchw, target_nhw, gamma):
    n, c, h, w = logits_nchw.shape
    x = jnp.transpose(logits_nchw, (0, 2, 3, 1)).reshape(-1, c).astype(jnp.float32)
    t = target_nhw.reshape(-1).astype(jnp.int32)
    logp = jax.nn.log_softmax(x, axis=-1)
    ce = -jnp.take_along_axis(logp, t[:, None], axis=-1)[:, 0]
    logpt = -jnp.mean(ce)
    pt = jnp.exp(logpt)
    return -(1.0 - pt) ** gamma * logpt


if __name__ == "__main__":
    key = jax.random.PRNGKey(0)
    k_x, k_t = jax.random.split(key)

    N, C, H, W = 2, 4, 16, 16
    x = jax.random.normal(k_x, (N, C, H, W), dtype=jnp.float32)
    target = jax.random.randint(k_t, (N, H, W), 0, C, dtype=jnp.int32)

    # Deterministic "class weight" parameter (shape (C,)); the reference
    # forward builds it but never passes it to cross_entropy, so it is unused.
    weight = jnp.ones((C,), dtype=jnp.float32)
    gamma = 2.0

    loss = focal_loss_2d(x, target, gamma=gamma, weight=weight,
                         size_average=True)
    loss = jax.block_until_ready(loss)

    ref = _reference_focal_loss(x, target, gamma)
    assert jnp.allclose(loss, ref, rtol=1e-5, atol=1e-6), (loss, ref)

    print("KERNEL_OK")
</pallas_src>

<mosaic_0001>
module attributes {stable_mosaic.version = 11 : i64} {
  func.func @_focal_ce_kernel(%arg0: i32, %arg1: i32, %arg2: i32, %arg3: memref<1x4x2x128xf32, #tpu.memory_space<vmem>>, %arg4: memref<1x1x2x128xi32, #tpu.memory_space<vmem>>, %arg5: memref<1x1x2x128xf32, #tpu.memory_space<vmem>>) attributes {dimension_semantics = [#tpu.dimension_semantics<parallel>, #tpu.dimension_semantics<parallel>, #tpu.dimension_semantics<arbitrary>], iteration_bounds = array<i64: 2, 1, 1>, scalar_prefetch = 0 : i64, scratch_operands = 0 : i64, tpu.core_type = #tpu.core_type<tc>, window_params = [{transform_indices = @transform_0, window_bounds = array<i64: 1, 4, 2, 128>}, {transform_indices = @transform_1, window_bounds = array<i64: 1, 1, 2, 128>}, {transform_indices = @transform_2, window_bounds = array<i64: 1, 1, 2, 128>}]} {
    %c0_i32 = arith.constant 0 : i32
    %0 = arith.cmpi eq, %arg2, %c0_i32 : i32
    %1 = arith.extui %0 : i1 to i32
    %c0_i32_0 = arith.constant 0 : i32
    %2 = arith.cmpi ne, %1, %c0_i32_0 : i32
    scf.if %2 {
      %cst_19 = arith.constant 0.000000e+00 : f32
      %26 = vector.broadcast %cst_19 : f32 to vector<1x1x2x128xf32>
      %c0_20 = arith.constant 0 : index
      %c0_21 = arith.constant 0 : index
      %c0_22 = arith.constant 0 : index
      %c0_23 = arith.constant 0 : index
      %27 = vector.load %arg5[%c0_20, %c0_21, %c0_22, %c0_23] : memref<1x1x2x128xf32, #tpu.memory_space<vmem>>, vector<1x1x2x128xf32>
      tpu.vector_store %arg5[%c0_20, %c0_21, %c0_22, %c0_23], %26 {strides = array<i32>} : memref<1x1x2x128xf32, #tpu.memory_space<vmem>>, vector<1x1x2x128xf32>,
    } else {
    }
    %c0 = arith.constant 0 : index
    %c0_1 = arith.constant 0 : index
    %c0_2 = arith.constant 0 : index
    %c0_3 = arith.constant 0 : index
    %3 = vector.load %arg3[%c0, %c0_1, %c0_2, %c0_3] : memref<1x4x2x128xf32, #tpu.memory_space<vmem>>, vector<1x4x2x128xf32>
    %4 = vector.shape_cast %3 : vector<1x4x2x128xf32> to vector<4x2x128xf32>
    %c0_4 = arith.constant 0 : index
    %c0_5 = arith.constant 0 : index
    %c0_6 = arith.constant 0 : index
    %c0_7 = arith.constant 0 : index
    %5 = vector.load %arg4[%c0_4, %c0_5, %c0_6, %c0_7] : memref<1x1x2x128xi32, #tpu.memory_space<vmem>>, vector<1x1x2x128xi32>
    %6 = vector.shape_cast %5 : vector<1x1x2x128xi32> to vector<2x128xi32>
    %cst = arith.constant dense<0xFF800000> : vector<2x128xf32>
    %7 = vector.multi_reduction <maximumf>, %4, %cst [0] : vector<4x2x128xf32> to vector<2x128xf32>
    %8 = vector.shape_cast %7 : vector<2x128xf32> to vector<1x2x128xf32>
    %9 = vector.broadcast %8 : vector<1x2x128xf32> to vector<4x2x128xf32>
    %10 = arith.subf %4, %9 : vector<4x2x128xf32>
    %11 = math.exp %10 : vector<4x2x128xf32>
    %cst_8 = arith.constant dense<0.000000e+00> : vector<2x128xf32>
    %12 = vector.multi_reduction <add>, %11, %cst_8 [0] : vector<4x2x128xf32> to vector<2x128xf32>
    %13 = math.log %12 : vector<2x128xf32>
    %14 = tpu.iota {dimensions = array<i32: 0>} : vector<4x2x128xi32>
    %15 = vector.shape_cast %6 : vector<2x128xi32> to vector<1x2x128xi32>
    %16 = vector.broadcast %15 : vector<1x2x128xi32> to vector<4x2x128xi32>
    %17 = arith.cmpi eq, %14, %16 : vector<4x2x128xi32>
    %cst_9 = arith.constant 0.000000e+00 : f32
    %18 = vector.broadcast %cst_9 : f32 to vector<4x2x128xf32>
    %19 = arith.select %17, %10, %18 : vector<4x2x128xi1>, vector<4x2x128xf32>
    %cst_10 = arith.constant dense<0.000000e+00> : vector<2x128xf32>
    %20 = vector.multi_reduction <add>, %19, %cst_10 [0] : vector<4x2x128xf32> to vector<2x128xf32>
    %21 = arith.subf %13, %20 : vector<2x128xf32>
    %c0_11 = arith.constant 0 : index
    %c0_12 = arith.constant 0 : index
    %c0_13 = arith.constant 0 : index
    %c0_14 = arith.constant 0 : index
    %22 = vector.load %arg5[%c0_11, %c0_12, %c0_13, %c0_14] : memref<1x1x2x128xf32, #tpu.memory_space<vmem>>, vector<1x1x2x128xf32>
    %23 = vector.shape_cast %21 : vector<2x128xf32> to vector<1x1x2x128xf32>
    %24 = arith.addf %22, %23 : vector<1x1x2x128xf32>
    %c0_15 = arith.constant 0 : index
    %c0_16 = arith.constant 0 : index
    %c0_17 = arith.constant 0 : index
    %c0_18 = arith.constant 0 : index
    %25 = vector.load %arg5[%c0_15, %c0_16, %c0_17, %c0_18] : memref<1x1x2x128xf32, #tpu.memory_space<vmem>>, vector<1x1x2x128xf32>
    tpu.vector_store %arg5[%c0_15, %c0_16, %c0_17, %c0_18], %24 {strides = array<i32>} : memref<1x1x2x128xf32, #tpu.memory_space<vmem>>, vector<1x1x2x128xf32>,
    return
  }
  func.func @transform_0(%arg0: i32, %arg1: i32, %arg2: i32) -> (i32, i32, i32, i32) {
    %c1_i32 = arith.constant 1 : i32
    %0 = arith.muli %arg1, %c1_i32 : i32
    %1 = arith.addi %0, %arg2 : i32
    %c0_i32 = arith.constant 0 : i32
    %2 = arith.minsi %1, %c0_i32 : i32
    %c0_i32_0 = arith.constant 0 : i32
    %c0_i32_1 = arith.constant 0 : i32
    %c0_i32_2 = arith.constant 0 : i32
    return %arg0, %c0_i32_0, %2, %c0_i32_1 : i32, i32, i32, i32
  }
  func.func @transform_1(%arg0: i32, %arg1: i32, %arg2: i32) -> (i32, i32, i32, i32) {
    %c1_i32 = arith.constant 1 : i32
    %0 = arith.muli %arg1, %c1_i32 : i32
    %1 = arith.addi %0, %arg2 : i32
    %c0_i32 = arith.constant 0 : i32
    %2 = arith.minsi %1, %c0_i32 : i32
    %c0_i32_0 = arith.constant 0 : i32
    %c0_i32_1 = arith.constant 0 : i32
    %c0_i32_2 = arith.constant 0 : i32
    return %arg0, %c0_i32_0, %2, %c0_i32_1 : i32, i32, i32, i32
  }
  func.func @transform_2(%arg0: i32, %arg1: i32, %arg2: i32) -> (i32, i32, i32, i32) {
    %c0_i32 = arith.constant 0 : i32
    %c0_i32_0 = arith.constant 0 : i32
    %c0_i32_1 = arith.constant 0 : i32
    return %arg0, %arg1, %c0_i32, %c0_i32_0 : i32, i32, i32, i32
  }
}

</mosaic_0001>

<bundles_post_ra>
// kernel: tpu_custom_call.1
= control target key start
LH: loop header
LB: loop body
LE: loop exit
PB: predicated region body
PF: predicated region fallthrough
CT: control target
= control target key end

     0   :  { %7 = vsyncpa [#allocation3], 0  ;;  %s857_s0 = inlined_call_operand.hbm [shape: f32[2,4,2,128], index: 0, kind: input, shape index: {}]   ;;  %s858_s1 = inlined_call_operand.hbm [shape: s32[2,1,2,128], index: 1, kind: input, shape index: {}]   ;;  %s859_s2 = inlined_call_operand.hbm [shape: f32[2,1,2,128], index: 2, kind: output, shape index: {}]  }
   0x1   :  { %9 = vsyncpa [#allocation3 + $0x1], 0 }
   0x2   :  { %10 = vsyncpa [#allocation6], 0 }
   0x3   :  { %12 = vsyncpa [#allocation6 + $0x1], 0 }
   0x4   :  { %13 = vsyncpa [#allocation4], 0 }
   0x5   :  { %15 = vsyncpa [#allocation4 + $0x1], 0  ;;  %s701_s9 = smov 0   ;;  %s703_s10 = smov 0  }
   0x6   :  { %s705_s11 = smov 0   ;;  %s707_s12 = smov 0  }
   0x7   :  { %s709_s13 = smov 0   ;;  %s711_s14 = smov 0  }
   0x8 LB: > { %s437_s15 = sadd.s32 4294967295, %s681_s14   ;;  %s438_s16 = sadd.s32 4294967294, %s681_s14   ;;  %s681_s14 = sphi %s711_s14, %s21_s14   ;;  %s677_s13 = sphi %s709_s13, %s869_s13   ;;  %s673_s12 = sphi %s707_s12, %s868_s12   ;;  %s669_s11 = sphi %s705_s11, %s867_s11   ;;  %s665_s10 = sphi %s703_s10, %s866_s10   ;;  %s661_s9 = sphi %s701_s9, %s865_s9  }
   0x9   : > { %s40_s17 = sadd.s32 1, %s677_s13  ;;  %s55_s18 = sadd.s32 1, %s669_s11 }
   0xa   : > { %p42_p0 = scmp.ge.s32.totalorder %s40_s17, 2  ;;  %p62_p1 = scmp.ne.s32.totalorder %s669_s11, %s665_s10 }
   0xb   : > { %p63_p2 = scmp.eq.s32.totalorder %s681_s14, 0  ;;  %p68_p3 = scmp.ne.s32.totalorder %s665_s10, %s661_s9 }
   0xc   : > { %s871_s17 = smov (%p42_p0, %s40_s17), 0  ;;  %p69_p5 = scmp.eq.s32.totalorder %s437_s15, 0 }
   0xd   : > { %p742_p4 = por %p63_p2, %p62_p1  ;;  %s50_s20 = ssub.s32 %s677_s13, %s871_s17 }
   0xe   : > { %p128_p6 = scmp.eq.s32.totalorder %s437_s15, 1  ;;  %p53_p7 = scmp.eq.s32.totalorder %s50_s20, 0 }
   0xf   : > { %p748_p8 = por %p69_p5, %p68_p3  ;;  %p134_p10 = scmp.eq.s32.totalorder %s438_s16, 1 }
  0x10   : > { %p752_p9 = por %p128_p6, %p62_p1  ;;  %p440_p12 = scmp.ge.s32.totalorder %s681_s14, 2 }
  0x11   : > { %s757_s23 = scalar_select %p53_p7, %s669_s11, %s55_s18  }
  0x12   : > { %p759_p11 = por %p134_p10, %p68_p3  ;;  %p472_p13 = scmp.lt.s32.totalorder %s681_s14, 2 }
  0x13   : > { %s154_s25 = sand.u32 1, %s669_s11   ;;  %s454_s27 = sshll.u32 %s677_s13, 3 }
  0x14   : > { %s441_s26 = sshll.u32 %s154_s25, 3  ;;  %s167_s30 = scalar_lea.hbm %s857_s0, %s454_s27 }
  0x15   : > { %s158_s3 = scalar_lea.vmem [#allocation2], %s441_s26  ;;  %s168_s5 = sshll.u32 %s167_s30, 4  ;;  %s169_s5 = int_to_ptr.hbm [resolvable:$true] %s168_s5 }
  0x16   : > { %s170_s4 = sshll.u32 %s158_s3, 4  ;;  %p772_p0 = pnand %p472_p13, %p742_p4  ;;  %s171_s4 = int_to_ptr.vmem [resolvable:$true] %s170_s4 }
  0x17   : > { %p446_p1 = scmp.ge.s32.totalorder %s681_s14, 1  ;;  %s155_s7 = scalar_lea.sflag [#allocation3], %s154_s25 }
  0x18   : > { %s683_s8 = smov 32   ;;  %s684_s15 = smov 2  }
  0x19   : > { %464 = dma.hbm_to_vmem [thread:$0]  (!%p772_p0), %s169_s5, 128, %s171_s4, %s155_s7, %s683_s8, %s683_s8, %s684_s15  }
  0x1a   : > { %p201_p2 = scmp.lt.s32.totalorder %s681_s14, 3  ;;  %s444_s16 = sshll.u32 %s154_s25, 1 }
  0x1b   : > { %s445_s18 = sshll.u32 %s677_s13, 1  ;;  %s184_s27 = scalar_lea.vmem [#allocation5], %s444_s16 }
  0x1c   : > { %p202_p3 = pnand %p446_p1, %p201_p2  ;;  %s192_s19 = scalar_lea.hbm %s858_s1, %s445_s18 }
  0x1d   : > { %s196_s28 = sshll.u32 %s184_s27, 4  ;;  %s194_s29 = sshll.u32 %s192_s19, 4  ;;  %s197_s28 = int_to_ptr.vmem [resolvable:$true] %s196_s28  ;;  %s195_s29 = int_to_ptr.hbm [resolvable:$true] %s194_s29 }
  0x1e   : > { %s181_s30 = scalar_lea.sflag [#allocation6], %s154_s25  ;;  %205 = sbr.rel (%p202_p3) target bundleno = 82 (0x52), region = 28 }
  0x1f   : > { %467 = dma.hbm_to_vmem [thread:$0]  (!%p772_p0), %s195_s29, 32, %s197_s28, %s181_s30  }
  0x20   : > { %s787_s3 = sand.u32 (!%p202_p3), 1, %s665_s10  }
  0x21   : > { %s447_s4 = sshll.u32 (!%p202_p3), %s787_s3, 3  ;;  %s208_s5 = scalar_lea.sflag (!%p202_p3), [#allocation3], %s787_s3 }
  0x22   : > { %s211_s7 = scalar_lea.vmem (!%p202_p3), [#allocation2], %s447_s4 }
  0x23   : > { %648 = dma.done.wait (%p748_p8), %s208_s5, 128  }
  0x24   : > { %650 = vsyncadd (%p748_p8), %s208_s5, 4294967168  ;;  %s448_s25 = sshll.u32 %s787_s3, 1  ;;  %s218_s6 = scalar_lea.sflag [#allocation6], %s787_s3 }
  0x25   : > { %s221_s8 = scalar_lea.vmem [#allocation5], %s448_s25 }
  0x26   : > { %652 = dma.done.wait (%p748_p8), %s218_s6, 32  }
  0x27   : > { %654 = vsyncadd (%p748_p8), %s218_s6, 4294967264  ;;  %s801_s15 = scalar_lea.vmem [#allocation7], %s448_s25  ;;  %v685_v0 = vmov 0.0   ;;  %vm264_vm0 = vcmask 1041408   ;;  %v259_v1 = vld [vmem:[%s211_s7] sm:$0x3] }
  0x28   : > { %258 = vst [vmem:[%s801_s15] sm:$0x3] %v685_v0  ;;  %v260_v2 = vld [vmem:[%s211_s7 + $0x2] sm:$0x3]  ;;  %v261_v3 = vld [vmem:[%s211_s7 + $0x4] sm:$0x3]  ;;  %v265_v5 = vsel %vm264_vm0, %v259_v1, -inf }
  0x29   : > { %v262_v4 = vld [vmem:[%s211_s7 + $0x6] sm:$0x3]  ;;  %v266_v6 = vsel %vm264_vm0, %v260_v2, -inf  ;;  %v267_v7 = vsel %vm264_vm0, %v261_v3, -inf  ;;  %v263_v20 = vld [vmem:[%s221_s8] sm:$0x3] }
  0x2a   : > { %v268_v8 = vsel %vm264_vm0, %v262_v4, -inf  ;;  %v269_v9 = vmax.f32 %v265_v5, %v266_v6  ;;  %vm293_vm1 = vcmp.eq.s32.totalorder %v263_v20, 0  ;;  %vm294_vm2 = vcmp.eq.s32.totalorder %v263_v20, 1  ;;  %s451_s21 = sshll.u32 %s673_s12, 1  ;;  %s326_s26 = sshll.u32 %s801_s15, 4  ;;  %s327_s26 = int_to_ptr.vmem [resolvable:$true] %s326_s26 }
  0x2b   : > { %v270_v10 = vmax.f32 %v267_v7, %v268_v8  ;;  %vm295_vm3 = vcmp.eq.s32.totalorder %v263_v20, 2  ;;  %vm296_vm4 = vcmp.eq.s32.totalorder %v263_v20, 3  ;;  %s324_s20 = scalar_lea.hbm %s859_s2, %s451_s21  ;;  %s313_s27 = scalar_lea.sflag [#allocation4], %s787_s3 }
  0x2c   : > { %s328_s19 = sshll.u32 %s324_s20, 4  ;;  %s615_s4 = scalar_lea.hbm %s859_s2, 4  ;;  %s329_s19 = int_to_ptr.hbm [resolvable:$true] %s328_s19 }
  0x2d   : > { %v271_v11 = vmax.f32 %v269_v9, %v270_v10  ;;  %s609_s28 = sshra.s32 %s329_s19, 4  ;;  %s610_s28 = int_to_ptr.hbm [resolvable:$true] %s609_s28 }
  0x2e   : > { %s611_s12 = scalar_lea.hbm %s610_s28, 2  ;;  %p616_p7 = scmp.lt.s32.totalorder %s610_s28, %s859_s2 }
  0x2f   : > { %v272_v12 = vsub.f32 %v259_v1, %v271_v11  ;;  %v273_v13 = vsub.f32 %v260_v2, %v271_v11  ;;  %v274_v14 = vsub.f32 %v261_v3, %v271_v11  ;;  %v275_v15 = vsub.f32 %v262_v4, %v271_v11  ;;  %v309_v45 = vld [vmem:[%s801_s15] sm:$0x3]  ;;  %p612_p4 = scmp.ne.s32.totalorder %s610_s28, %s611_s12  ;;  %p617_p8 = scmp.lt.s32.totalorder %s615_s4, %s611_s12 }
  0x31   : > { %v276_v16 = vmul.f32 1.442695, %v272_v12  ;;  %v278_v17 = vmul.f32 1.442695, %v273_v13  ;;  %v280_v18 = vmul.f32 1.442695, %v274_v14  ;;  %p613_p5 = pnand %p612_p4, %p752_p9  ;;  %p618_p10 = por %p617_p8, %p616_p7 }
  0x32   : > { %v282_v19 = vmul.f32 1.442695, %v275_v15  ;;  %v297_v22 = vsel %vm293_vm1, %v272_v12, 0.0  ;;  %v298_v23 = vsel %vm294_vm2, %v273_v13, 0.0  ;;  %v299_v34 = vsel %vm295_vm3, %v274_v14, 0.0 }
  0x33   : > { %525 = vpow2.f32 %v276_v16  ;;  %v301_v31 = vsel %vm264_vm0, %v297_v22, 0.0  ;;  %v302_v32 = vsel %vm264_vm0, %v298_v23, 0.0  ;;  %v304_v38 = vsel %vm264_vm0, %v299_v34, 0.0  ;;  %p614_p6 = pneg %p613_p5 }
  0x34   : > { %527 = vpow2.f32 %v278_v17  ;;  %v303_v36 = vadd.f32 %v302_v32, %v301_v31  ;;  %v300_v39 = vsel %vm296_vm4, %v275_v15, 0.0 }
  0x35   : > { %529 = vpow2.f32 %v280_v18  ;;  %v306_v41 = vsel %vm264_vm0, %v300_v39, 0.0  ;;  %p619_p13 = pnand %p618_p10, %p614_p6 }
  0x36   : > { %531 = vpow2.f32 %v282_v19  ;;  %v305_v40 = vadd.f32 %v304_v38, %v303_v36 }
  0x38   : > { %v307_v42 = vadd.f32 %v306_v41, %v305_v40 }
  0x39   : > { %v526_v21 = vpop.eup %525 }
  0x3a   : > { %v528_v24 = vpop.eup %527  ;;  %v284_v25 = vsel %vm264_vm0, %v526_v21, 0.0 }
  0x3b   : > { %v530_v26 = vpop.eup %529  ;;  %v285_v27 = vsel %vm264_vm0, %v528_v24, 0.0 }
  0x3c   : > { %v532_v28 = vpop.eup %531  ;;  %v286_v29 = vadd.f32 %v285_v27, %v284_v25  ;;  %v287_v30 = vsel %vm264_vm0, %v530_v26, 0.0 }
  0x3d   : > { %v289_v33 = vsel %vm264_vm0, %v532_v28, 0.0 }
  0x3e   : > { %v288_v35 = vadd.f32 %v287_v30, %v286_v29 }
  0x40   : > { %v290_v37 = vadd.f32 %v289_v33, %v288_v35 }
  0x42   : > { %533 = vlog2.f32 %v290_v37 }
  0x48   : > { %v534_v43 = vpop.eup %533 }
  0x49   : > { %v292_v44 = vmul.f32 0.6931472, %v534_v43 }
  0x4b   : > { %v308_v46 = vsub.f32 %v292_v44, %v307_v42 }
  0x4d   : > { %v310_v47 = vadd.f32 %v309_v45, %v308_v46 }
  0x4f   : > { %311 = vst [vmem:[%s801_s15] sm:$0x3] %v310_v47 }
  0x50   : > { %622 = shalt.err (!%p619_p13)
}
  0x51   : > { %459 = dma.vmem_to_hbm [thread:$0]  (%p752_p9), %s327_s26, 32, %s329_s19, %s313_s27  }
  0x52 PF: > { %s340_s3 = sand.u32 1, %s661_s9   ;;  %p469_p0 = pnand %p440_p12, %p759_p11 }
  0x53   : > { %s341_s25 = scalar_lea.sflag [#allocation4], %s340_s3 }
  0x54   : > { %p470_p1 = pneg %p469_p0 }
  0x56   : > { %656 = dma.done.wait (%p470_p1), %s341_s25, 32  }
  0x57   : > { %658 = vsyncadd (%p470_p1), %s341_s25, 4294967264  ;;  %s21_s14 = sadd.s32 1, %s681_s14   ;;  %s865_s9 = smov %s665_s10 }
  0x58   : > { %p18_p2 = scmp.ge.s32.totalorder %s21_s14, 4   ;;  %s866_s10 = smov %s669_s11 }
  0x59   : > { %s867_s11 = smov %s757_s23  ;;  %s868_s12 = smov %s677_s13 }
  0x5a   : > { %s869_s13 = smov %s871_s17  ;;  %20 = sbr.rel (!%p18_p2) target bundleno = 8 (0x8), region = 90 }
  0x5f   :  { %347 = vsyncpa [#allocation3], 1 }
  0x60   :  { %349 = vsyncpa [#allocation3 + $0x1], 1 }
  0x61   :  { %350 = vsyncpa [#allocation6], 1 }
  0x62   :  { %352 = vsyncpa [#allocation6 + $0x1], 1 }
  0x63   :  { %353 = vsyncpa [#allocation4], 1 }
  0x64   :  { %355 = vsyncpa [#allocation4 + $0x1], 1 }

</bundles_post_ra>
